<compile_context>
chip_gen: v7x
topology: tpu7x:2x2x1
jax: 0.10.0
libtpu: 0.0.40
codegen_flags: <defaults>
</compile_context>

<pallas_src>
import jax
import jax.numpy as jnp
from jax.experimental import pallas as pl
from jax.experimental.pallas import tpu as pltpu

_LANE = 128                              # TPU lane width (last-dim granularity)
_VMEM_TILE_BUDGET = 16 * 1024 * 1024     # double-buffered in+out ~= 4*TB*TL*TD*itemsize
_WHOLE_TENSOR_BYTES = 2 * 1024 * 1024    # below this: one block, no grid overhead
_TILE_TARGET = 512                       # ~85% of HBM roofline at 512-wide tiles (v6e)


def _transpose_block_kernel(x_ref, o_ref):
    # x_ref: (TB, TL, TD) VMEM tile ; o_ref: (TB, TD, TL) VMEM tile.
    # The swap of the last two axes lowers to XLU transpose ops on-chip.
    o_ref[...] = jnp.swapaxes(x_ref[...], 1, 2)


def _pick_tile(dim, target):
    """Largest 128-multiple <= target that divides `dim`; else the full dim.

    Keeping both tile dims 128-multiples keeps the input lane dim, the output
    lane dim and both sublane dims aligned (also covers bf16/int8 sublane
    packing: 128 is a multiple of 16 and 32), so stores stay unmasked `vst`
    rather than masked partial stores.  Full-dim blocks are always legal.
    """
    if dim % _LANE != 0 or dim <= _LANE:
        return dim
    t = min(dim, max(_LANE, (target // _LANE) * _LANE))
    while t >= _LANE:
        if dim % t == 0:
            return t
        t -= _LANE
    return dim  # unreachable when dim % 128 == 0


def _pick_plane_tiles(L, D, itemsize):
    tl = _pick_tile(L, _TILE_TARGET)
    td = _pick_tile(D, _TILE_TARGET)
    # Shrink aligned tiles until the double-buffered in+out footprint fits the
    # per-generation VMEM budget (v7x has only 64 MiB VMEM / 32 MiB scoped default).
    while 4 * tl * td * itemsize > _VMEM_TILE_BUDGET:
        if td >= tl and D % _LANE == 0 and td > _LANE:
            td = _pick_tile(D, td // 2)
        elif L % _LANE == 0 and tl > _LANE:
            tl = _pick_tile(L, tl // 2)
        elif D % _LANE == 0 and td > _LANE:
            td = _pick_tile(D, td // 2)
        else:
            # TODO(synk): both dims unaligned AND huge -> forced full-dim block may
            # exceed VMEM; not on the PatchTST hot path (planes there are small).
            break
    return tl, td


def _pick_batch_tile(B, tl, td, itemsize):
    """Largest divisor of B whose grouped block still fits the VMEM budget.

    This is the main lever for the common PatchTST shape [bs*n_vars,
    patch_num, d_model]: the (L, D) plane is only tens of KiB, so without
    grouping every grid step would be overhead-dominated.
    """
    per_batch = 4 * tl * td * itemsize      # double-buffered in+out per batch slice
    if per_batch >= _VMEM_TILE_BUDGET:
        return 1
    cap = min(B, max(1, _VMEM_TILE_BUDGET // per_batch))
    best = 1
    for tb in range(1, cap + 1):
        if B % tb == 0:
            best = tb
    return best


def _transpose_whole(x):
    """Small activations: one whole-tensor block, single grid step."""
    B, L, D = x.shape
    nbytes = x.size * x.dtype.itemsize
    return pl.pallas_call(
        _transpose_block_kernel,
        out_shape=jax.ShapeDtypeStruct((B, D, L), x.dtype),
        grid=(1,),
        in_specs=[pl.BlockSpec((B, L, D), lambda i: (0, 0, 0))],
        out_specs=pl.BlockSpec((B, D, L), lambda i: (0, 0, 0)),
        compiler_params=pltpu.CompilerParams(
            dimension_semantics=("arbitrary",),
            vmem_limit_bytes=32 * 1024 * 1024,
        ),
        cost_estimate=pl.CostEstimate(
            flops=0, transcendentals=0, bytes_accessed=2 * nbytes),
    )(x)


def _transpose_tiled(x, tile_l=None, tile_d=None):
    """General path: grid over (batch-groups, L-tiles, D-tiles), lane-dense blocks."""
    B, L, D = x.shape
    itemsize = x.dtype.itemsize
    tl, td = _pick_plane_tiles(L, D, itemsize)
    if tile_l is not None:
        tl = _pick_tile(L, tile_l)
    if tile_d is not None:
        td = _pick_tile(D, tile_d)
    tb = _pick_batch_tile(B, tl, td, itemsize)
    nbytes = x.size * itemsize
    grid = (B // tb, L // tl, D // td)
    return pl.pallas_call(
        _transpose_block_kernel,
        out_shape=jax.ShapeDtypeStruct((B, D, L), x.dtype),
        grid=grid,
        in_specs=[pl.BlockSpec((tb, tl, td), lambda b, i, j: (b, i, j))],
        out_specs=pl.BlockSpec((tb, td, tl), lambda b, i, j: (b, j, i)),
        compiler_params=pltpu.CompilerParams(
            # No cross-tile dependence: every axis is safely "parallel" so
            # v7x's two TensorCores can split the grid (no effect on v5e/v6e).
            dimension_semantics=("parallel", "parallel", "parallel"),
            # Blocks are budgeted to <= 16 MiB of double-buffered in+out, which
            # fits every generation's scoped default; be explicit anyway.
            vmem_limit_bytes=max(32 * 1024 * 1024, 6 * tb * tl * td * itemsize),
        ),
        cost_estimate=pl.CostEstimate(
            flops=0, transcendentals=0, bytes_accessed=2 * nbytes),
    )(x)


def pallas_transpose_1_2(x, tile_l=None, tile_d=None):
    """Equivalent of `x.transpose(1, 2).contiguous()` for a 3-D tensor."""
    nbytes = x.size * x.dtype.itemsize
    if tile_l is None and tile_d is None and nbytes <= _WHOLE_TENSOR_BYTES:
        # Small activation: per-grid-step overhead would dominate finer tiling.
        return _transpose_whole(x)
    return _transpose_tiled(x, tile_l=tile_l, tile_d=tile_d)


class TransposePallas:
    """Mirror of the PyTorch module: Transpose(*dims, contiguous=...)."""

    def __init__(self, *dims, contiguous=False):
        self.dims = dims
        self.contiguous = contiguous  # JAX outputs are always materialized; kept for parity

    def __call__(self, x):
        d0, d1 = self.dims
        nd = x.ndim
        if nd == 3 and sorted((d0 % nd, d1 % nd)) == [1, 2]:
            # PatchTST hot path: [B, L, D] -> [B, D, L] through the Pallas kernel.
            # NOTE: when this feeds BatchNorm1d / a matmul, the transpose can be
            # fused into the consumer's BlockSpec index_map instead, deleting the
            # HBM round-trip entirely.
            return pallas_transpose_1_2(x)
        # TODO(synk): other dim pairs / ranks are not on the PatchTST hot path;
        # they stay as plain-JAX glue (same semantics as torch.transpose).
        return jnp.swapaxes(x, d0, d1)


if __name__ == "__main__":
    key = jax.random.PRNGKey(0)
    mod = TransposePallas(1, 2, contiguous=True)

    # 1) PatchTST-like small activation: whole-tensor single-block path.
    B, L, D = 2, 16, 128
    x = jax.random.normal(key, (B, L, D), dtype=jnp.float32)
    y = jax.block_until_ready(mod(x))
    assert y.shape == (B, D, L) and y.dtype == x.dtype
    assert jnp.array_equal(y, jnp.swapaxes(x, 1, 2))

    # 2) Tiled path, forced 128x128 tiles so the full 3-D grid is exercised.
    x2 = jax.random.normal(jax.random.fold_in(key, 1), (2, 256, 256), jnp.float32)
    y2 = jax.block_until_ready(_transpose_tiled(x2, tile_l=128, tile_d=128))
    assert y2.shape == (2, 256, 256)
    assert jnp.array_equal(y2, jnp.swapaxes(x2, 1, 2))

    # 3) bf16 activations (sublane-packed dtype) through the module wrapper.
    x3 = jax.random.normal(jax.random.fold_in(key, 2), (2, 32, 128), jnp.bfloat16)
    y3 = jax.block_until_ready(mod(x3))
    assert y3.shape == (2, 128, 32) and y3.dtype == jnp.bfloat16
    assert jnp.array_equal(y3, jnp.swapaxes(x3, 1, 2))

    # 4) Tiled path with a small, unaligned (L, D) plane and grouped batches
    #    (the [bs*n_vars, patch_num, d_model] PatchTST case): exercises tb > 1.
    x4 = jax.random.normal(jax.random.fold_in(key, 3), (8, 24, 64), jnp.float32)
    y4 = jax.block_until_ready(_transpose_tiled(x4))
    assert y4.shape == (8, 64, 24)
    assert jnp.array_equal(y4, jnp.swapaxes(x4, 1, 2))

    # 5) Non-(1,2) dim pair falls back to plain JAX (same torch.transpose semantics).
    y5 = jax.block_until_ready(TransposePallas(0, 2)(x))
    assert jnp.array_equal(y5, jnp.swapaxes(x, 0, 2))

    print("KERNEL_OK")
</pallas_src>

<mosaic_0001>
module attributes {stable_mosaic.version = 11 : i64} {
  func.func @_transpose_block_kernel(%arg0: i32, %arg1: memref<2x16x128xf32, #tpu.memory_space<vmem>>, %arg2: memref<2x128x16xf32, #tpu.memory_space<vmem>>) attributes {dimension_semantics = [#tpu.dimension_semantics<arbitrary>], iteration_bounds = array<i64: 1>, scalar_prefetch = 0 : i64, scratch_operands = 0 : i64, tpu.core_type = #tpu.core_type<tc>, window_params = [{pipeline_mode = #tpu.pipeline_mode<synchronous>, transform_indices = @transform_0, window_bounds = array<i64: 2, 16, 128>}, {pipeline_mode = #tpu.pipeline_mode<synchronous>, transform_indices = @transform_1, window_bounds = array<i64: 2, 128, 16>}]} {
    %c0 = arith.constant 0 : index
    %c0_0 = arith.constant 0 : index
    %c0_1 = arith.constant 0 : index
    %0 = vector.load %arg1[%c0, %c0_0, %c0_1] : memref<2x16x128xf32, #tpu.memory_space<vmem>>, vector<2x16x128xf32>
    %1 = tpu.transpose %0, [0, 2, 1] : vector<2x16x128xf32> -> vector<2x128x16xf32>
    %c0_2 = arith.constant 0 : index
    %c0_3 = arith.constant 0 : index
    %c0_4 = arith.constant 0 : index
    %2 = vector.load %arg2[%c0_2, %c0_3, %c0_4] : memref<2x128x16xf32, #tpu.memory_space<vmem>>, vector<2x128x16xf32>
    tpu.vector_store %arg2[%c0_2, %c0_3, %c0_4], %1 {strides = array<i32>} : memref<2x128x16xf32, #tpu.memory_space<vmem>>, vector<2x128x16xf32>,
    return
  }
  func.func @transform_0(%arg0: i32) -> (i32, i32, i32) {
    %c0_i32 = arith.constant 0 : i32
    %c0_i32_0 = arith.constant 0 : i32
    %c0_i32_1 = arith.constant 0 : i32
    %c0_i32_2 = arith.constant 0 : i32
    return %c0_i32, %c0_i32_0, %c0_i32_1 : i32, i32, i32
  }
  func.func @transform_1(%arg0: i32) -> (i32, i32, i32) {
    %c0_i32 = arith.constant 0 : i32
    %c0_i32_0 = arith.constant 0 : i32
    %c0_i32_1 = arith.constant 0 : i32
    %c0_i32_2 = arith.constant 0 : i32
    return %c0_i32, %c0_i32_0, %c0_i32_1 : i32, i32, i32
  }
}

</mosaic_0001>

<bundles_post_ra>
// kernel: tpu_custom_call.1
= control target key start
LH: loop header
LB: loop body
LE: loop exit
PB: predicated region body
PF: predicated region fallthrough
CT: control target
= control target key end

     0   :  { %6 = vsyncpa [#allocation3], 0  ;;  %s156_s6 = smov [#allocation2]   ;;  %s309_s0 = inlined_call_operand.hbm [shape: f32[2,16,128], index: 0, kind: input, shape index: {}]   ;;  %s310_s1 = inlined_call_operand.vmem [shape: f32[2,128,16], index: 1, kind: output, shape index: {}]  }
   0x1   :  { %s12_s7 = sshll.u32 %s156_s6, 4  ;;  %s132_s10 = scalar_lea.hbm %s309_s0, 512  ;;  %s13_s7 = int_to_ptr.vmem [resolvable:$true] %s12_s7 }
   0x2   :  { %p133_p0 = scmp.ne.s32.totalorder %s309_s0, %s132_s10  ;;  %p136_p1 = scmp.lt.u32.totalorder %s132_s10, %s309_s0 }
   0x4   :  { %p138_p2 = pnand %p136_p1, %p133_p0 }
   0x6   :  { %141 = shalt.err (!%p138_p2)
}
   0x7   :  { %s142_s15 = scalar_lea.vmem %s13_s7, 512  ;;  %p147_p4 = scmp.lt.s32.totalorder %s13_s7, %s13_s7 }
   0x8   :  { %p143_p3 = scmp.ne.s32.totalorder %s13_s7, %s142_s15  ;;  %p148_p5 = scmp.lt.s32.totalorder %s142_s15, %s142_s15 }
   0xa   :  { %p149_p6 = por %p148_p5, %p147_p4 }
   0xc   :  { %p150_p7 = pnand %p149_p6, %p143_p3 }
   0xe   :  { %153 = shalt.err (!%p150_p7)
}
   0xf   :  { %s157_s16 = smov 128   ;;  %s158_s17 = smov 8  }
  0x10   :  { %18 = dma.hbm_to_vmem [thread:$0]  %s309_s0, 512, %s13_s7, [#allocation3], %s157_s16, %s157_s16, %s158_s17  }
  0x11   :  { %154 = dma.done.wait [#allocation3], 512  }
  0x12   :  { %155 = vsyncadd [#allocation3], 4294966784  ;;  %v24_v0 = vld [vmem:[#allocation2 + $0x10] sm:$0xff]  ;;  %v22_v1 = vld [vmem:[#allocation2] sm:$0xff]  ;;  %vm90_vm0 = vcmask 130048  }
  0x13   :  { %58 = vxpose.xlu1.b32.start [1/2] (short) %v24_v0, 128  ;;  %26 = vxpose.xlu0.b32.start [1/2] (short) %v22_v1, 128  ;;  %v25_v2 = vld [vmem:[#allocation2 + $0x18] sm:$0xff]  ;;  %v23_v3 = vld [vmem:[#allocation2 + $0x8] sm:$0xff] }
  0x17   :  { %59 = vxpose.xlu1.b32.end [2/2] (short) %v25_v2, 128  ;;  %27 = vxpose.xlu0.b32.end [2/2] (short) %v23_v3, 128 }
  0x93   :  { %v74_v4 = vpop.trf.xlu1  ;;  %v42_v5 = vpop.trf.xlu0 }
  0x94   :  { %107 = vst.msk [vmem:[%s310_s1 + $0x80] sm:$0xff] %vm90_vm0, %v74_v4  ;;  %91 = vst.msk [vmem:[%s310_s1] sm:$0xff] %vm90_vm0, %v42_v5 }
  0x97   :  { %v75_v6 = vpop.trf.xlu1  ;;  %v43_v7 = vpop.trf.xlu0 }
  0x98   :  { %108 = vst.msk [vmem:[%s310_s1 + $0x88] sm:$0xff] %vm90_vm0, %v75_v6  ;;  %92 = vst.msk [vmem:[%s310_s1 + $0x8] sm:$0xff] %vm90_vm0, %v43_v7 }
  0x9b   :  { %v76_v8 = vpop.trf.xlu1  ;;  %v44_v9 = vpop.trf.xlu0 }
  0x9c   :  { %109 = vst.msk [vmem:[%s310_s1 + $0x90] sm:$0xff] %vm90_vm0, %v76_v8  ;;  %93 = vst.msk [vmem:[%s310_s1 + $0x10] sm:$0xff] %vm90_vm0, %v44_v9 }
  0x9f   :  { %v77_v10 = vpop.trf.xlu1  ;;  %v45_v11 = vpop.trf.xlu0 }
  0xa0   :  { %110 = vst.msk [vmem:[%s310_s1 + $0x98] sm:$0xff] %vm90_vm0, %v77_v10  ;;  %94 = vst.msk [vmem:[%s310_s1 + $0x18] sm:$0xff] %vm90_vm0, %v45_v11 }
  0xa3   :  { %v78_v12 = vpop.trf.xlu1  ;;  %v46_v13 = vpop.trf.xlu0 }
  0xa4   :  { %111 = vst.msk [vmem:[%s310_s1 + $0xa0] sm:$0xff] %vm90_vm0, %v78_v12  ;;  %95 = vst.msk [vmem:[%s310_s1 + $0x20] sm:$0xff] %vm90_vm0, %v46_v13 }
  0xa7   :  { %v79_v14 = vpop.trf.xlu1  ;;  %v47_v15 = vpop.trf.xlu0 }
  0xa8   :  { %112 = vst.msk [vmem:[%s310_s1 + $0xa8] sm:$0xff] %vm90_vm0, %v79_v14  ;;  %96 = vst.msk [vmem:[%s310_s1 + $0x28] sm:$0xff] %vm90_vm0, %v47_v15 }
  0xab   :  { %v80_v16 = vpop.trf.xlu1  ;;  %v48_v17 = vpop.trf.xlu0 }
  0xac   :  { %113 = vst.msk [vmem:[%s310_s1 + $0xb0] sm:$0xff] %vm90_vm0, %v80_v16  ;;  %97 = vst.msk [vmem:[%s310_s1 + $0x30] sm:$0xff] %vm90_vm0, %v48_v17 }
  0xaf   :  { %v81_v18 = vpop.trf.xlu1  ;;  %v49_v19 = vpop.trf.xlu0 }
  0xb0   :  { %114 = vst.msk [vmem:[%s310_s1 + $0xb8] sm:$0xff] %vm90_vm0, %v81_v18  ;;  %98 = vst.msk [vmem:[%s310_s1 + $0x38] sm:$0xff] %vm90_vm0, %v49_v19 }
  0xb3   :  { %v82_v20 = vpop.trf.xlu1  ;;  %v50_v21 = vpop.trf.xlu0 }
  0xb4   :  { %115 = vst.msk [vmem:[%s310_s1 + $0xc0] sm:$0xff] %vm90_vm0, %v82_v20  ;;  %99 = vst.msk [vmem:[%s310_s1 + $0x40] sm:$0xff] %vm90_vm0, %v50_v21 }
  0xb7   :  { %v83_v22 = vpop.trf.xlu1  ;;  %v51_v23 = vpop.trf.xlu0 }
  0xb8   :  { %116 = vst.msk [vmem:[%s310_s1 + $0xc8] sm:$0xff] %vm90_vm0, %v83_v22  ;;  %100 = vst.msk [vmem:[%s310_s1 + $0x48] sm:$0xff] %vm90_vm0, %v51_v23 }
  0xbb   :  { %v84_v24 = vpop.trf.xlu1  ;;  %v52_v25 = vpop.trf.xlu0 }
  0xbc   :  { %117 = vst.msk [vmem:[%s310_s1 + $0xd0] sm:$0xff] %vm90_vm0, %v84_v24  ;;  %101 = vst.msk [vmem:[%s310_s1 + $0x50] sm:$0xff] %vm90_vm0, %v52_v25 }
  0xbf   :  { %v85_v26 = vpop.trf.xlu1  ;;  %v53_v27 = vpop.trf.xlu0 }
  0xc0   :  { %118 = vst.msk [vmem:[%s310_s1 + $0xd8] sm:$0xff] %vm90_vm0, %v85_v26  ;;  %102 = vst.msk [vmem:[%s310_s1 + $0x58] sm:$0xff] %vm90_vm0, %v53_v27 }
  0xc3   :  { %v86_v28 = vpop.trf.xlu1  ;;  %v54_v29 = vpop.trf.xlu0 }
  0xc4   :  { %119 = vst.msk [vmem:[%s310_s1 + $0xe0] sm:$0xff] %vm90_vm0, %v86_v28  ;;  %103 = vst.msk [vmem:[%s310_s1 + $0x60] sm:$0xff] %vm90_vm0, %v54_v29 }
  0xc7   :  { %v87_v30 = vpop.trf.xlu1  ;;  %v55_v31 = vpop.trf.xlu0 }
  0xc8   :  { %120 = vst.msk [vmem:[%s310_s1 + $0xe8] sm:$0xff] %vm90_vm0, %v87_v30  ;;  %104 = vst.msk [vmem:[%s310_s1 + $0x68] sm:$0xff] %vm90_vm0, %v55_v31 }
  0xcb   :  { %v88_v32 = vpop.trf.xlu1  ;;  %v56_v33 = vpop.trf.xlu0 }
  0xcc   :  { %121 = vst.msk [vmem:[%s310_s1 + $0xf0] sm:$0xff] %vm90_vm0, %v88_v32  ;;  %105 = vst.msk [vmem:[%s310_s1 + $0x70] sm:$0xff] %vm90_vm0, %v56_v33 }
  0xcf   :  { %v89_v34 = vpop.trf.xlu1  ;;  %v57_v35 = vpop.trf.xlu0 }
  0xd0   :  { %122 = vst.msk [vmem:[%s310_s1 + $0xf8] sm:$0xff] %vm90_vm0, %v89_v34  ;;  %106 = vst.msk [vmem:[%s310_s1 + $0x78] sm:$0xff] %vm90_vm0, %v57_v35 }
  0xd1   :  { %127 = vsyncpa [#allocation3], 1 }

</bundles_post_ra>
